<compile_context>
chip_gen: v6e
topology: v6e:2x2x1
jax: 0.10.0
libtpu: 0.0.40
codegen_flags: <defaults>
</compile_context>

<pallas_src>
import jax
import jax.numpy as jnp
from jax import lax
from jax.experimental import pallas as pl
from jax.experimental.pallas import tpu as pltpu

IN_FEATURES = 784
OUT_FEATURES = 100

# Universal batch-tile cap. ~7.3 MiB total VMEM at tm=1024 -> fits the scoped
# default on v5e (16 MiB), v6e (32 MiB) and v7x (32 MiB). (v6e could go to 2048
# with vmem_limit_bytes headroom; not needed for this memory-bound kernel.)
TM_MAX = 1024


def _bnn_linear_relu_kernel(x_ref, w_ref, b_ref, o_ref):
    # x_ref: (tm, 784) f32     w_ref: (784, 100) bf16 (pre-transposed, resident)
    # b_ref: (1, 100)  f32     o_ref: (tm, 100) f32
    acc = lax.dot_general(
        x_ref[...].astype(jnp.bfloat16),        # in-kernel cast; x read once from HBM
        w_ref[...],
        dimension_numbers=(((1,), (0,)), ((), ())),   # (tm,K) x (K,N)
        preferred_element_type=jnp.float32)
    o_ref[...] = jnp.maximum(acc + b_ref[...], 0.0)


def _pick_tm(B):
    """Batch tile: multiple of 8, <= TM_MAX, and >=2 grid steps when B > 8
    (so the parallel batch axis shards across both TCs on v7x)."""
    if B <= 8:
        return B  # single full-dim block (legal even when B is not a multiple of 8)
    half = pl.cdiv(B, 2)
    return min(TM_MAX, ((half + 7) // 8) * 8)


def bnn_linear_relu(x, w, b):
    """relu(x @ w.T + b) via a Pallas TPU kernel.

    x: (B, 784) f32
    w: (100, 784) f32   (PyTorch (out, in) layout)
    b: (100,) f32
    Returns (B, 100) f32.
    """
    B = x.shape[0]
    tm = _pick_tm(B)
    grid = (pl.cdiv(B, tm),)

    # One-off, tiny (~160 KB) wrapper-side transpose + cast of the weight so the
    # kernel feeds the MXU a clean (K, N) operand with no per-step relayout.
    w_t = w.T.astype(jnp.bfloat16)                    # (784, 100)
    b_row = b.astype(jnp.float32).reshape(1, OUT_FEATURES)

    out = pl.pallas_call(
        _bnn_linear_relu_kernel,
        out_shape=jax.ShapeDtypeStruct((B, OUT_FEATURES), jnp.float32),
        grid=grid,
        in_specs=[
            pl.BlockSpec((tm, IN_FEATURES), lambda i: (i, 0)),            # x tile (f32)
            pl.BlockSpec((IN_FEATURES, OUT_FEATURES), lambda i: (0, 0)),  # W resident
            pl.BlockSpec((1, OUT_FEATURES), lambda i: (0, 0)),            # bias resident
        ],
        out_specs=pl.BlockSpec((tm, OUT_FEATURES), lambda i: (i, 0)),
        compiler_params=pltpu.CompilerParams(
            dimension_semantics=("parallel",)),
    )(x.astype(jnp.float32), w_t, b_row)

    return out


def softplus(x):
    # TODO(synk): PyTorch's F.softplus uses a threshold=20 linearization; for
    # rho ~ -5 the difference is negligible.
    return jnp.logaddexp(x, 0.0)


class BNNFMNISTBaseParams:
    """Deterministic variational parameters for BNNLinear(784, 100)."""

    def __init__(self, key):
        k_wmu, k_wrho, k_bmu, k_brho = jax.random.split(key, 4)
        # PyTorch-style shapes: weight (out, in), bias (out,)
        self.weight_mu = 0.1 * jax.random.normal(
            k_wmu, (OUT_FEATURES, IN_FEATURES), dtype=jnp.float32)
        self.weight_rho = -5.0 + 0.1 * jax.random.normal(
            k_wrho, (OUT_FEATURES, IN_FEATURES), dtype=jnp.float32)
        self.bias_mu = 0.1 * jax.random.normal(
            k_bmu, (OUT_FEATURES,), dtype=jnp.float32)
        self.bias_rho = -5.0 + 0.1 * jax.random.normal(
            k_brho, (OUT_FEATURES,), dtype=jnp.float32)


def bnn_fmnist_base_forward(params, x, sample_W, eps_key):
    """Forward pass of BNNFMNISTBase.

    x: any shape flattening to (-1, 784), e.g. (B, 1, 28, 28) NCHW.
    """
    x = x.reshape(-1, IN_FEATURES).astype(jnp.float32)

    if sample_W:
        # TODO(synk): for tiny batches, fuse reparameterization (softplus + eps)
        # into the kernel with pltpu.prng_seed/prng_random_bits to skip the
        # W HBM write + re-read; irrelevant for large B (W is ~80 KB).
        k_w, k_b = jax.random.split(eps_key)
        w_sigma = softplus(params.weight_rho)
        b_sigma = softplus(params.bias_rho)
        weight = params.weight_mu + w_sigma * jax.random.normal(
            k_w, params.weight_mu.shape, dtype=jnp.float32)
        bias = params.bias_mu + b_sigma * jax.random.normal(
            k_b, params.bias_mu.shape, dtype=jnp.float32)
    else:
        weight = params.weight_mu
        bias = params.bias_mu

    return bnn_linear_relu(x, weight, bias)


if __name__ == "__main__":
    key = jax.random.PRNGKey(0)
    k_params, k_x, k_eps = jax.random.split(key, 3)

    params = BNNFMNISTBaseParams(k_params)

    # Small FMNIST-like batch: (B, 1, 28, 28) NCHW -> reshaped to (B, 784).
    B = 8
    x = jax.random.normal(k_x, (B, 1, 28, 28), dtype=jnp.float32)

    out = bnn_fmnist_base_forward(params, x, sample_W=True, eps_key=k_eps)
    out = jax.block_until_ready(out)
    assert out.shape == (B, OUT_FEATURES), out.shape

    # Cross-check against a pure-JAX reference using the same sampled weights
    # and the same bf16-input / f32-accumulate precision as the kernel.
    k_w, k_b = jax.random.split(k_eps)
    w = params.weight_mu + softplus(params.weight_rho) * jax.random.normal(
        k_w, params.weight_mu.shape, dtype=jnp.float32)
    b = params.bias_mu + softplus(params.bias_rho) * jax.random.normal(
        k_b, params.bias_mu.shape, dtype=jnp.float32)
    ref = jnp.maximum(
        jnp.dot(x.reshape(-1, IN_FEATURES).astype(jnp.bfloat16),
                w.astype(jnp.bfloat16).T,
                preferred_element_type=jnp.float32) + b,
        0.0)
    assert jnp.allclose(out, ref, atol=1e-2, rtol=1e-2), float(
        jnp.max(jnp.abs(out - ref)))

    # Also exercise the sample_W=False (deterministic mean-weight) path and a
    # ragged / multi-step batch to cover the cdiv grid + masked last block.
    B2 = 37
    x2 = jax.random.normal(k_x, (B2, 1, 28, 28), dtype=jnp.float32)
    out2 = jax.block_until_ready(
        bnn_fmnist_base_forward(params, x2, sample_W=False, eps_key=k_eps))
    ref2 = jnp.maximum(
        jnp.dot(x2.reshape(-1, IN_FEATURES).astype(jnp.bfloat16),
                params.weight_mu.astype(jnp.bfloat16).T,
                preferred_element_type=jnp.float32) + params.bias_mu,
        0.0)
    assert out2.shape == (B2, OUT_FEATURES), out2.shape
    assert jnp.allclose(out2, ref2, atol=1e-2, rtol=1e-2), float(
        jnp.max(jnp.abs(out2 - ref2)))

    print("KERNEL_OK")
</pallas_src>

<mosaic_0001>
module attributes {stable_mosaic.version = 11 : i64} {
  func.func @_bnn_linear_relu_kernel(%arg0: i32, %arg1: memref<8x784xf32, #tpu.memory_space<vmem>>, %arg2: memref<784x100xbf16, #tpu.memory_space<vmem>>, %arg3: memref<1x100xf32, #tpu.memory_space<vmem>>, %arg4: memref<8x100xf32, #tpu.memory_space<vmem>>) attributes {dimension_semantics = [#tpu.dimension_semantics<parallel>], iteration_bounds = array<i64: 1>, scalar_prefetch = 0 : i64, scratch_operands = 0 : i64, tpu.core_type = #tpu.core_type<tc>, window_params = [{transform_indices = @transform_0, window_bounds = array<i64: 8, 784>}, {pipeline_mode = #tpu.pipeline_mode<synchronous>, transform_indices = @transform_1, window_bounds = array<i64: 784, 100>}, {pipeline_mode = #tpu.pipeline_mode<synchronous>, transform_indices = @transform_2, window_bounds = array<i64: 1, 100>}, {transform_indices = @transform_3, window_bounds = array<i64: 8, 100>}]} {
    %c0 = arith.constant 0 : index
    %c0_0 = arith.constant 0 : index
    %0 = vector.load %arg1[%c0, %c0_0] : memref<8x784xf32, #tpu.memory_space<vmem>>, vector<8x784xf32>
    %1 = arith.truncf %0 : vector<8x784xf32> to vector<8x784xbf16>
    %c0_1 = arith.constant 0 : index
    %c0_2 = arith.constant 0 : index
    %2 = vector.load %arg2[%c0_1, %c0_2] : memref<784x100xbf16, #tpu.memory_space<vmem>>, vector<784x100xbf16>
    %cst = arith.constant dense<0.000000e+00> : vector<8x100xf32>
    %3 = tpu.matmul %1, %2, %cst {dimension_numbers = #tpu.dot_dimension_numbers<[1], [0], [0], [1], [0, 0, 1, 1], [], []>} : vector<8x784xbf16>, vector<784x100xbf16>, vector<8x100xf32> -> vector<8x100xf32>
    %c0_3 = arith.constant 0 : index
    %c0_4 = arith.constant 0 : index
    %4 = vector.load %arg3[%c0_3, %c0_4] : memref<1x100xf32, #tpu.memory_space<vmem>>, vector<1x100xf32>
    %5 = vector.broadcast %4 : vector<1x100xf32> to vector<8x100xf32>
    %6 = arith.addf %3, %5 : vector<8x100xf32>
    %cst_5 = arith.constant 0.000000e+00 : f32
    %7 = vector.broadcast %cst_5 : f32 to vector<8x100xf32>
    %8 = arith.maximumf %6, %7 : vector<8x100xf32>
    %c0_6 = arith.constant 0 : index
    %c0_7 = arith.constant 0 : index
    %9 = vector.load %arg4[%c0_6, %c0_7] : memref<8x100xf32, #tpu.memory_space<vmem>>, vector<8x100xf32>
    tpu.vector_store %arg4[%c0_6, %c0_7], %8 {strides = array<i32>} : memref<8x100xf32, #tpu.memory_space<vmem>>, vector<8x100xf32>,
    return
  }
  func.func @transform_0(%arg0: i32) -> (i32, i32) {
    %c0_i32 = arith.constant 0 : i32
    %c0_i32_0 = arith.constant 0 : i32
    return %arg0, %c0_i32 : i32, i32
  }
  func.func @transform_1(%arg0: i32) -> (i32, i32) {
    %c0_i32 = arith.constant 0 : i32
    %c0_i32_0 = arith.constant 0 : i32
    %c0_i32_1 = arith.constant 0 : i32
    return %c0_i32, %c0_i32_0 : i32, i32
  }
  func.func @transform_2(%arg0: i32) -> (i32, i32) {
    %c0_i32 = arith.constant 0 : i32
    %c0_i32_0 = arith.constant 0 : i32
    %c0_i32_1 = arith.constant 0 : i32
    return %c0_i32, %c0_i32_0 : i32, i32
  }
  func.func @transform_3(%arg0: i32) -> (i32, i32) {
    %c0_i32 = arith.constant 0 : i32
    %c0_i32_0 = arith.constant 0 : i32
    return %arg0, %c0_i32 : i32, i32
  }
}

</mosaic_0001>

<bundles_post_ra>
// kernel: tpu_custom_call.1
= control target key start
LH: loop header
LB: loop body
LE: loop exit
PB: predicated region body
PF: predicated region fallthrough
CT: control target
= control target key end

     0   :  { %v809_v44 = vmov 0.0   ;;  %vm810_vm0 = vmmov 0   ;;  %s1006_s0 = inlined_call_operand.vmem [shape: f32[8,784], index: 0, kind: input, shape index: {}]   ;;  %s1007_s1 = inlined_call_operand.vmem [shape: bf16[784,100], index: 1, kind: input, shape index: {}]   ;;  %s1008_s2 = inlined_call_operand.vmem [shape: f32[1,100], index: 2, kind: input, shape index: {}]   ;;  %s1009_s3 = inlined_call_operand.hbm [shape: f32[8,100], index: 3, kind: output, shape index: {}]  }
   0x1   :  { %v738_v0 = vld [vmem:[%s1007_s1 + $0x78] sm:$0xff]   ;;  %v742_v4 = vld [vmem:[%s1007_s1 + $0x70] sm:$0xff]   ;;  %v746_v8 = vld [vmem:[%s1007_s1 + $0x68] sm:$0xff]  }
   0x2   :  { %v739_v1 = vld [vmem:[%s1007_s1 + $0x38] sm:$0xff]   ;;  %661 = vmatprep.subr.bf16.mxu0 %v738_v0  ;;  %v743_v5 = vld [vmem:[%s1007_s1 + $0x30] sm:$0xff]   ;;  %v747_v9 = vld [vmem:[%s1007_s1 + $0x28] sm:$0xff]  }
   0x3   :  { %v740_v2 = vld [vmem:[%s1007_s1 + $0xf8] sm:$0xff]   ;;  %662 = vmatpush3.bf16.msra.mxu0 %v739_v1  ;;  %v744_v6 = vld [vmem:[%s1007_s1 + $0xf0] sm:$0xff]   ;;  %v748_v10 = vld [vmem:[%s1007_s1 + $0xe8] sm:$0xff]  }
   0x4   :  { %v741_v3 = vld [vmem:[%s1007_s1 + $0xb8] sm:$0xff]   ;;  %683 = vmatprep.subr.bf16.mxu1 %v740_v2  ;;  %663 = vmatprep.subr.bf16.mxu0 %v742_v4  ;;  %v745_v7 = vld [vmem:[%s1007_s1 + $0xb0] sm:$0xff]   ;;  %v749_v11 = vld [vmem:[%s1007_s1 + $0xa8] sm:$0xff]  }
   0x5   :  { %684 = vmatpush3.bf16.msra.mxu1 %v741_v3  ;;  %v750_v12 = vld [vmem:[%s1007_s1 + $0x60] sm:$0xff]   ;;  %v754_v16 = vld [vmem:[%s1007_s1 + $0x58] sm:$0xff]   ;;  %v758_v20 = vld [vmem:[%s1007_s1 + $0x50] sm:$0xff]  }
   0x6   :  { %685 = vmatprep.subr.bf16.mxu1 %v744_v6  ;;  %v751_v13 = vld [vmem:[%s1007_s1 + $0x20] sm:$0xff]   ;;  %v755_v17 = vld [vmem:[%s1007_s1 + $0x18] sm:$0xff]   ;;  %v759_v21 = vld [vmem:[%s1007_s1 + $0x10] sm:$0xff]  }
   0x7   :  { %664 = vmatpush3.bf16.msra.mxu0 %v743_v5  ;;  %v752_v14 = vld [vmem:[%s1007_s1 + $0xe0] sm:$0xff]   ;;  %v756_v18 = vld [vmem:[%s1007_s1 + $0xd8] sm:$0xff]   ;;  %v760_v22 = vld [vmem:[%s1007_s1 + $0xd0] sm:$0xff]  }
   0x8   :  { %665 = vmatprep.subr.bf16.mxu0 %v746_v8  ;;  %v753_v15 = vld [vmem:[%s1007_s1 + $0xa0] sm:$0xff]   ;;  %v757_v19 = vld [vmem:[%s1007_s1 + $0x98] sm:$0xff]   ;;  %v761_v23 = vld [vmem:[%s1007_s1 + $0x90] sm:$0xff]  }
   0x9   :  { %686 = vmatpush3.bf16.msra.mxu1 %v745_v7  ;;  %v762_v24 = vld [vmem:[%s1007_s1 + $0x48] sm:$0xff]   ;;  %v766_v28 = vld [vmem:[%s1007_s1 + $0x40] sm:$0xff]   ;;  %v770_v36 = vld [vmem:[%s1007_s1 + $0x178] sm:$0xff]  }
   0xa   :  { %687 = vmatprep.subr.bf16.mxu1 %v748_v10  ;;  %v763_v25 = vld [vmem:[%s1007_s1 + $0x8] sm:$0xff]   ;;  %v767_v29 = vld [vmem:[%s1007_s1] sm:$0xff]   ;;  %v19_v37 = vld [vmem:[%s1006_s0 + $0x18] sm:$0xff] }
   0xb   :  { %666 = vmatpush3.bf16.msra.mxu0 %v747_v9  ;;  %v764_v26 = vld [vmem:[%s1007_s1 + $0xc8] sm:$0xff]   ;;  %v768_v30 = vld [vmem:[%s1007_s1 + $0xc0] sm:$0xff]   ;;  %v26_v38 = vpack.c.bf16 %v19_v37, %v19_v37  ;;  %v771_v39 = vld [vmem:[%s1007_s1 + $0x138] sm:$0xff]  }
   0xc   :  { %667 = vmatprep.subr.bf16.mxu0 %v750_v12  ;;  %v765_v27 = vld [vmem:[%s1007_s1 + $0x88] sm:$0xff]   ;;  %v769_v33 = vld [vmem:[%s1007_s1 + $0x80] sm:$0xff]   ;;  %v18_v40 = vld [vmem:[%s1006_s0 + $0x10] sm:$0xff] }
   0xd   :  { %688 = vmatpush3.bf16.msra.mxu1 %v749_v11  ;;  %v17_v31 = vld [vmem:[%s1006_s0 + $0x8] sm:$0xff]  ;;  %v16_v34 = vld [vmem:[%s1006_s0] sm:$0xff]  ;;  %505 = vmatprep.mubr.bf16.mxu1 %v26_v38  ;;  %v25_v41 = vpack.c.bf16 %v18_v40, %v18_v40  ;;  %v772_v42 = vld [vmem:[%s1007_s1 + $0x170] sm:$0xff]  }
   0xe   :  { %689 = vmatprep.subr.bf16.mxu1 %v752_v14  ;;  %v24_v32 = vpack.c.bf16 %v17_v31, %v17_v31  ;;  %v23_v35 = vpack.c.bf16 %v16_v34, %v16_v34  ;;  %v773_v43 = vld [vmem:[%s1007_s1 + $0x130] sm:$0xff]   ;;  %v774_v45 = vld [vmem:[%s1007_s1 + $0x168] sm:$0xff]   ;;  %v776_v47 = vld [vmem:[%s1007_s1 + $0x160] sm:$0xff]  }
   0xf   :  { %668 = vmatpush3.bf16.msra.mxu0 %v751_v13  ;;  %v775_v46 = vld [vmem:[%s1007_s1 + $0x128] sm:$0xff]   ;;  %v777_v48 = vld [vmem:[%s1007_s1 + $0x120] sm:$0xff]   ;;  %v778_v49 = vld [vmem:[%s1007_s1 + $0x158] sm:$0xff]  }
  0x10   :  { %669 = vmatprep.subr.bf16.mxu0 %v754_v16  ;;  %465 = vmatprep.mubr.bf16.mxu0 %v24_v32  ;;  %v779_v50 = vld [vmem:[%s1007_s1 + $0x118] sm:$0xff]   ;;  %v780_v51 = vld [vmem:[%s1007_s1 + $0x150] sm:$0xff]   ;;  %v786_v52 = vld [vmem:[%s1007_s1 + $0x180] sm:$0xff]  }
  0x11   :  { %690 = vmatpush3.bf16.msra.mxu1 %v753_v15  ;;  %v21_v53 = vld [vmem:[%s1006_s0 + $0x28] sm:$0xff]  ;;  %v22_v55 = vld [vmem:[%s1006_s0 + $0x30] sm:$0xff] }
  0x12   :  { %691 = vmatprep.subr.bf16.mxu1 %v756_v18  ;;  %v28_v54 = vpack.c.bf16 %v21_v53, %v21_v53 }
  0x13   :  { %670 = vmatpush3.bf16.msra.mxu0 %v755_v17 }
  0x14   :  { %671 = vmatprep.subr.bf16.mxu0 %v758_v20 }
  0x15   :  { %692 = vmatpush3.bf16.msra.mxu1 %v757_v19 }
  0x16   :  { %693 = vmatprep.subr.bf16.mxu1 %v760_v22 }
  0x17   :  { %672 = vmatpush3.bf16.msra.mxu0 %v759_v21 }
  0x18   :  { %673 = vmatprep.subr.bf16.mxu0 %v762_v24 }
  0x19   :  { %694 = vmatpush3.bf16.msra.mxu1 %v761_v23 }
  0x1a   :  { %695 = vmatprep.subr.bf16.mxu1 %v764_v26 }
  0x1b   :  { %674 = vmatpush3.bf16.msra.mxu0 %v763_v25 }
  0x1c   :  { %675 = vmatprep.subr.bf16.mxu0 %v766_v28 }
  0x1d   :  { %696 = vmatpush3.bf16.msra.mxu1 %v765_v27 }
  0x1e   :  { %697 = vmatprep.subr.bf16.mxu1 %v768_v30 }
  0x1f   :  { %676 = vmatpush3.bf16.msra.mxu0 %v767_v29 }
  0x20   :  { %705 = vmatprep.subr.bf16.mxu0 %v770_v36 }
  0x21   :  { %698 = vmatpush3.bf16.msra.mxu1 %v769_v33 }
  0x22   :  { %466 = vmatmul.mubr.bf16.vlgmr.msra.gmra.mxu0 %v23_v35  ;;  %729 = vmatprep.subr.bf16.mxu1 %v809_v44 }
  0x23   :  { %706 = vmatpush3.bf16.msra.mxu0 %v771_v39 }
  0x24   :  { %506 = vmatmul.mubr.bf16.vlgmr.msra.gmra.mxu1 %v25_v41  ;;  %707 = vmatprep.subr.bf16.mxu0 %v772_v42 }
  0x25   :  { %731 = vmatprep.mubr.msk.bf16.mxu1 %vm810_vm0, %v809_v44 }
  0x27   :  { %708 = vmatpush3.bf16.msra.mxu0 %v773_v43 }
  0x28   :  { %709 = vmatprep.subr.bf16.mxu0 %v774_v45 }
  0x2b   :  { %710 = vmatpush3.bf16.msra.mxu0 %v775_v46 }
  0x2c   :  { %711 = vmatprep.subr.bf16.mxu0 %v776_v47 }
  0x2f   :  { %712 = vmatpush3.bf16.msra.mxu0 %v777_v48 }
  0x30   :  { %713 = vmatprep.subr.bf16.mxu0 %v778_v49 }
  0x31   :  { %8 = vsyncpa [#allocation3], 0  ;;  %v781_v56 = vld [vmem:[%s1007_s1 + $0x110] sm:$0xff]   ;;  %730 = vmatpush3.bf16.msra.mxu1 %v786_v52  ;;  %v29_v57 = vpack.c.bf16 %v22_v55, %v22_v55  ;;  %vm429_vm1 = vcmask 130048   ;;  %v782_v58 = vld [vmem:[%s1007_s1 + $0x148] sm:$0xff]   ;;  %545 = vmatprep.mubr.bf16.mxu0 %v28_v54  ;;  %vm594_vm2 = vcmask 818176  }
  0x32   :  { %v783_v59 = vld [vmem:[%s1007_s1 + $0x108] sm:$0xff]   ;;  %v784_v60 = vld [vmem:[%s1007_s1 + $0x140] sm:$0xff]  }
  0x33   :  { %714 = vmatpush3.bf16.msra.mxu0 %v779_v50  ;;  %v785_v61 = vld [vmem:[%s1007_s1 + $0x100] sm:$0xff]  }
  0x34   :  { %715 = vmatprep.subr.bf16.mxu0 %v780_v51  ;;  %732 = vmatmul.mubr.msk.bf16.vlgmr.msra.gmra.mxu1 %vm429_vm1, %v29_v57  ;;  %v20_v62 = vld [vmem:[%s1006_s0 + $0x20] sm:$0xff]  ;;  %s811_s0 = smov [#allocation2]  }
  0x35   :  { %v27_v63 = vpack.c.bf16 %v20_v62, %v20_v62  ;;  %v610_v13 = vld [vmem:[%s1008_s2] ss:$0 sm:$0xff]  ;;  %s602_s17 = sshll.u32 %s811_s0, 4  ;;  %s603_s17 = int_to_ptr.vmem [resolvable:$true] %s602_s17 }
  0x36   :  { %s787_s18 = scalar_lea.vmem %s603_s17, 128  ;;  %p792_p1 = scmp.lt.s32.totalorder %s603_s17, %s603_s17 }
  0x37   :  { %716 = vmatpush3.bf16.msra.mxu0 %v781_v56  ;;  %p788_p0 = scmp.ne.s32.totalorder %s603_s17, %s787_s18  ;;  %p793_p2 = scmp.lt.s32.totalorder %s787_s18, %s787_s18 }
  0x38   :  { %717 = vmatprep.subr.bf16.mxu0 %v782_v58 }
  0x39   :  { %p794_p3 = por %p793_p2, %p792_p1 }
  0x3b   :  { %718 = vmatpush3.bf16.msra.mxu0 %v783_v59  ;;  %p795_p4 = pnand %p794_p3, %p788_p0 }
  0x3c   :  { %719 = vmatprep.subr.bf16.mxu0 %v784_v60 }
  0x3f   :  { %720 = vmatpush3.bf16.msra.mxu0 %v785_v61 }
  0x42   :  { %546 = vmatmul.mubr.bf16.vlgmr.msra.gmra.mxu0 %v27_v63 }
  0xe2   :  { %v677_v0 = vpop.f32.mrf.mxu0 }
  0xe4   :  { %v678_v1 = vpop.f32.mrf.mxu0  ;;  %v699_v2 = vpop.f32.mrf.mxu1 }
  0xe5   :  { %v679_v12 = vadd.f32 %v678_v1, %v677_v0 }
  0xe6   :  { %v680_v3 = vpop.f32.mrf.mxu0  ;;  %v700_v4 = vpop.f32.mrf.mxu1 }
  0xe7   :  { %v468_v14 = vadd.f32 %v679_v12, %v610_v13  ;;  %v701_v15 = vadd.f32 %v700_v4, %v699_v2 }
  0xe8   :  { %v681_v5 = vpop.f32.mrf.mxu0  ;;  %v702_v6 = vpop.f32.mrf.mxu1 }
  0xe9   :  { %v508_v18 = vadd.f32 %v701_v15, %v468_v14 }
  0xea   :  { %v703_v7 = vpop.f32.mrf.mxu1 }
  0xf4   :  { %v587_v8 = vpop.f32.mrf.mxu1 }
  0xf6   :  { %v733_v9 = vpop.f32.mrf.mxu1 }
  0xf8   :  { %v590_v10 = vpop.f32.mrf.mxu1 }
  0xfa   :  { %v734_v11 = vpop.f32.mrf.mxu1 }
 0x102   :  { %v721_v16 = vpop.f32.mrf.mxu0 }
 0x104   :  { %v722_v17 = vpop.f32.mrf.mxu0 }
 0x105   :  { %v723_v19 = vadd.f32 %v722_v17, %v721_v16 }
 0x106   :  { %v724_v20 = vpop.f32.mrf.mxu0 }
 0x107   :  { %v548_v21 = vadd.f32 %v723_v19, %v508_v18 }
 0x108   :  { %v725_v22 = vpop.f32.mrf.mxu0 }
 0x109   :  { %v588_v23 = vadd.f32 %v587_v8, %v548_v21 }
 0x10b   :  { %v593_v24 = vmax.f32 %v588_v23, 0.0 }
 0x10d   :  { %595 = vst.msk [vmem:[#allocation2] sm:$0xff] %vm594_vm2, %v593_v24 }
 0x10e   :  { %798 = shalt.err (!%p795_p4)
}
 0x10f   :  { %605 = dma.vmem_to_hbm [thread:$0]  %s603_s17, 128, %s1009_s3, [#allocation3]  }
 0x110   :  { %807 = dma.done.wait [#allocation3], 128  }
 0x111   :  { %808 = vsyncadd [#allocation3], 4294967168 }
 0x112   :  { %609 = vsyncpa [#allocation3], 1 }

</bundles_post_ra>
